<compile_context>
chip_gen: v7x
topology: tpu7x:2x2x1
jax: 0.10.0
libtpu: 0.0.40
codegen_flags: <defaults>
</compile_context>

<pallas_src>
import functools
import math

import jax
import jax.numpy as jnp
from jax.experimental import pallas as pl
from jax.experimental.pallas import tpu as pltpu

_LANE = 128
_SUBLANE = 8          # f32 sublane count; bf16 packs 16, int8 packs 32


def _round_up(v, m):
    return ((v + m - 1) // m) * m


def _vmem_capacity_bytes():
    """Per-core VMEM capacity (128 MiB on v5e/v6e, 64 MiB on v7x)."""
    try:
        return int(pltpu.get_tpu_info().vmem_capacity_bytes)
    except Exception:      # interpret mode / older jax: be conservative (v7x)
        return 64 << 20


def _gwl_kernel(x_ref, w_ref, b_ref, o_ref, *scratch, n_k, w_chunked):
    """x_ref: (tb, C, td)    w_ref: (1, C, td) if w_chunked else (n_k, C, td)
       b_ref: (1, C)         o_ref: (tb, C)    scratch: () or ((tb, C) f32,)"""
    if w_chunked:
        w = w_ref[...]                      # (1, C, td) -> broadcasts over tb
    elif n_k == 1:
        w = w_ref[0]                        # (C, td), static index
    else:
        w = w_ref[pl.program_id(1)]         # (C, td): resident W, pick k-th chunk

    # Multiply in the input dtype (bf16-native on v6e/v7x); accumulate the
    # lane-axis reduction in f32 without materialising a full f32 product.
    part = jnp.sum(x_ref[...] * w, axis=-1, dtype=jnp.float32)      # (tb, C)

    if n_k == 1:
        # Single-K fast path: no scratch accumulator, write out in one shot.
        o_ref[...] = (part + b_ref[...].astype(jnp.float32)).astype(o_ref.dtype)
        return

    acc_ref = scratch[0]
    k = pl.program_id(1)

    @pl.when(k == 0)
    def _init():
        acc_ref[...] = jnp.zeros_like(acc_ref)

    acc_ref[...] += part

    @pl.when(k == n_k - 1)
    def _finalize():
        o_ref[...] = (acc_ref[...] + b_ref[...].astype(jnp.float32)).astype(o_ref.dtype)


def _plan_tiles(Bp, Cp, D, in_itemsize, out_itemsize, budget, tb_req, td_req):
    """Pick (tb, td, w_chunked) so the pipelined footprint fits `budget`."""
    sub = max(_SUBLANE, 32 // max(in_itemsize, 1))     # sublane packing for dtype
    c_sub = _round_up(Cp, sub)                         # C padded to sublanes
    c_lane = _round_up(Cp, _LANE)                      # C padded to lanes

    def lanes(td):
        return _round_up(td, _LANE)

    def footprint(tb, td, w_resident):
        tb8 = _round_up(tb, _SUBLANE)
        x_b = 2 * tb * c_sub * lanes(td) * in_itemsize                 # double-buffered
        w_b = 2 * c_sub * (lanes(D) if w_resident else lanes(td)) * in_itemsize
        b_b = 2 * _SUBLANE * c_lane * in_itemsize
        o_b = 2 * tb8 * c_lane * out_itemsize
        acc = tb8 * c_lane * 4
        return x_b + w_b + b_b + o_b + acc

    min_tb = min(Bp, _SUBLANE)
    # Keep W fully VMEM-resident (fetched once) unless it alone would eat more
    # than half the budget.
    w_resident = 2 * c_sub * lanes(D) * in_itemsize <= budget // 2

    # --- hidden-dim tile -----------------------------------------------------
    if td_req is not None:
        td = min(td_req, D)
    elif footprint(min_tb, D, w_resident) <= budget:
        td = D                                            # common case: no D split
    else:
        min_td = min(D, max(_LANE, (2 * 1024) // in_itemsize))   # >= ~2 KiB DMA runs
        best_fit = best_div = None
        cand = (D // _LANE) * _LANE
        while cand >= _LANE:
            if footprint(min_tb, cand, w_resident) <= budget:
                if best_fit is None:
                    best_fit = cand                       # largest tile that fits
                if D % cand == 0:
                    if cand >= min_td:
                        best_div = cand                   # largest divisor, long runs
                        break
                    if best_div is None:
                        best_div = cand
            cand -= _LANE
        if best_div is not None:
            td = best_div
        elif best_fit is not None:
            td = best_fit                                 # non-divisor: wrapper pads D
        else:
            td = min(D, _LANE)
    if td >= D:
        td, w_resident = D, True

    # --- batch tile ----------------------------------------------------------
    if tb_req is not None:
        tb = max(1, min(tb_req, Bp))
    elif footprint(Bp, td, w_resident) <= budget:
        tb = Bp
    else:
        tb = min(Bp, _SUBLANE)
        while tb * 2 <= Bp and footprint(tb * 2, td, w_resident) <= budget:
            tb *= 2
        while tb + _SUBLANE <= Bp and footprint(tb + _SUBLANE, td, w_resident) <= budget:
            tb += _SUBLANE
    if tb_req is None and Bp >= 2 * _SUBLANE:
        # Guarantee >= 2 batch grid steps so the "parallel" axis can be split
        # across v7x's two TensorCores (no-op on v5e/v6e's single core).
        half = _round_up((Bp + 1) // 2, _SUBLANE)
        if half >= Bp:
            half = max(_SUBLANE, (Bp // 2) // _SUBLANE * _SUBLANE)
        tb = min(tb, half)

    return dict(tb=tb, td=td, w_chunked=not w_resident,
                footprint=footprint(tb, td, w_resident))


def groupwise_linear(x, W, b, *, tb=None, td=None, vmem_budget_bytes=None):
    """x: [B, C, D], W: [1, C, D], b: [1, C] -> [B, C]   (out = (W*x).sum(-1) + b)

    Optional tb/td override the batch / hidden-dim tile (tb is in units of the
    folded batch, see the batch->class fold below)."""
    B, C, D = x.shape
    assert W.shape == (1, C, D) and b.shape == (1, C)
    orig_B, orig_C = B, C
    in_itemsize = x.dtype.itemsize
    out_dtype = x.dtype

    # Sublane density for small / unaligned num_class: fold a factor f of the
    # batch into the class axis so C*f is a multiple of the sublane packing.
    # x's reshape is pure metadata (contiguous); only the tiny W/b get tiled.
    sub = max(_SUBLANE, 32 // in_itemsize)
    fold = 1
    if C % sub != 0:
        f = sub // math.gcd(C, sub)
        if f > 1 and B % f == 0:
            fold = f
    if fold > 1:
        B, C = B // fold, C * fold
        x = x.reshape(B, C, D)
        W = jnp.tile(W, (1, fold, 1))
        b = jnp.tile(b, (1, fold))

    capacity = _vmem_capacity_bytes()
    budget = int(0.70 * capacity) if vmem_budget_bytes is None else vmem_budget_bytes

    plan = _plan_tiles(B, C, D, in_itemsize, out_dtype.itemsize, budget, tb, td)
    tb, td, w_chunked = plan["tb"], plan["td"], plan["w_chunked"]

    # Rare fallback: td does not divide D -> zero-pad D in the wrapper (zeros
    # contribute 0 to the reduction) instead of a VMEM-OOM full-D tile.
    if D % td != 0:
        d_pad = pl.cdiv(D, td) * td
        x = jnp.pad(x, ((0, 0), (0, 0), (0, d_pad - D)))
        W = jnp.pad(W, ((0, 0), (0, 0), (0, d_pad - D)))
        D = d_pad
    n_k = D // td
    grid = (pl.cdiv(B, tb), n_k)          # reduction (hidden-dim) axis last

    if w_chunked:
        # W too large to keep resident: stream one (1, C, td) chunk per k step.
        w_in = W
        w_spec = pl.BlockSpec((1, C, td), lambda i, k: (0, 0, k))
    else:
        # W fetched once, fully VMEM-resident as (n_k, C, td); the kernel picks
        # the k-th chunk with a first-axis index (no per-step W re-DMA).
        w_in = W.reshape(C, n_k, td).transpose(1, 0, 2)
        w_spec = pl.BlockSpec((n_k, C, td), lambda i, k: (0, 0, 0))

    kernel = functools.partial(_gwl_kernel, n_k=n_k, w_chunked=w_chunked)
    scratch = [] if n_k == 1 else [pltpu.VMEM((tb, C), jnp.float32)]

    # Compiler VMEM limit follows the actual footprint (incl. user tb/td),
    # capped at the physical per-core capacity of this generation.
    vmem_limit = int(min(capacity,
                         max(int(plan["footprint"] * 1.3) + (4 << 20), 32 << 20)))

    out = pl.pallas_call(
        kernel,
        out_shape=jax.ShapeDtypeStruct((B, C), out_dtype),
        grid_spec=pltpu.PrefetchScalarGridSpec(
            num_scalar_prefetch=0,
            grid=grid,
            in_specs=[
                pl.BlockSpec((tb, C, td), lambda i, k: (i, 0, k)),   # x: pipelined
                w_spec,                                              # W: resident/chunked
                pl.BlockSpec((1, C), lambda i, k: (0, 0)),           # b: resident
            ],
            out_specs=pl.BlockSpec((tb, C), lambda i, k: (i, 0)),
            scratch_shapes=scratch,
        ),
        compiler_params=pltpu.CompilerParams(
            dimension_semantics=("parallel", "arbitrary"),
            vmem_limit_bytes=vmem_limit,
        ),
    )(x, w_in, b)

    if fold > 1:
        out = out.reshape(orig_B, orig_C)
    return out


def groupwise_linear_ref(x, W, b):
    return jnp.sum(W * x, axis=-1) + b


if __name__ == "__main__":
    # --- 1) small shapes matching the module spec (f32) ----------------------
    num_class, hidden_dim, batch = 4, 32, 2
    kx, kw, kb = jax.random.split(jax.random.PRNGKey(0), 3)
    stdv = 1.0 / math.sqrt(hidden_dim)          # reset_parameters(): U(-stdv, stdv)
    W = jax.random.uniform(kw, (1, num_class, hidden_dim), minval=-stdv, maxval=stdv,
                           dtype=jnp.float32)
    b = jax.random.uniform(kb, (1, num_class), minval=-stdv, maxval=stdv,
                           dtype=jnp.float32)
    x = jax.random.normal(kx, (batch, num_class, hidden_dim), dtype=jnp.float32)

    out = jax.block_until_ready(groupwise_linear(x, W, b))
    assert out.shape == (batch, num_class)
    assert jnp.allclose(out, groupwise_linear_ref(x, W, b), atol=1e-5, rtol=1e-5), \
        "mismatch vs reference"

    # --- 2) multi-K-step path: resident-W chunk indexing + f32 accumulator ---
    B2, C2, D2 = 32, 8, 256
    k2x, k2w, k2b = jax.random.split(jax.random.PRNGKey(1), 3)
    s2 = 1.0 / math.sqrt(D2)
    W2 = jax.random.uniform(k2w, (1, C2, D2), minval=-s2, maxval=s2, dtype=jnp.float32)
    b2 = jax.random.uniform(k2b, (1, C2), minval=-s2, maxval=s2, dtype=jnp.float32)
    x2 = jax.random.normal(k2x, (B2, C2, D2), dtype=jnp.float32)
    out2 = jax.block_until_ready(groupwise_linear(x2, W2, b2, tb=8, td=128))
    assert jnp.allclose(out2, groupwise_linear_ref(x2, W2, b2), atol=1e-4, rtol=1e-4), \
        "multi-K path mismatch"

    # --- 3) unaligned num_class (batch->class fold) + partial trailing block --
    B3, C3, D3 = 20, 4, 256
    k3x, k3w, k3b = jax.random.split(jax.random.PRNGKey(2), 3)
    s3 = 1.0 / math.sqrt(D3)
    W3 = jax.random.uniform(k3w, (1, C3, D3), minval=-s3, maxval=s3, dtype=jnp.float32)
    b3 = jax.random.uniform(k3b, (1, C3), minval=-s3, maxval=s3, dtype=jnp.float32)
    x3 = jax.random.normal(k3x, (B3, C3, D3), dtype=jnp.float32)
    out3 = jax.block_until_ready(groupwise_linear(x3, W3, b3, tb=8))
    assert jnp.allclose(out3, groupwise_linear_ref(x3, W3, b3), atol=1e-4, rtol=1e-4), \
        "folded / partial-block path mismatch"

    # --- 4) bf16: 16-row sublane fold; product rounded to bf16 before f32 acc -
    B4, C4, D4 = 4, 4, 128
    k4x, k4w, k4b = jax.random.split(jax.random.PRNGKey(3), 3)
    s4 = 1.0 / math.sqrt(D4)
    W4 = jax.random.uniform(k4w, (1, C4, D4), minval=-s4, maxval=s4, dtype=jnp.bfloat16)
    b4 = jax.random.uniform(k4b, (1, C4), minval=-s4, maxval=s4, dtype=jnp.bfloat16)
    x4 = jax.random.normal(k4x, (B4, C4, D4), dtype=jnp.bfloat16)
    out4 = jax.block_until_ready(groupwise_linear(x4, W4, b4))
    ref4 = groupwise_linear_ref(x4.astype(jnp.float32), W4.astype(jnp.float32),
                                b4.astype(jnp.float32))
    assert jnp.allclose(out4.astype(jnp.float32), ref4, atol=2e-2, rtol=2e-2), \
        "bf16 path mismatch"

    print("KERNEL_OK")
</pallas_src>

<mosaic_0001>
module attributes {stable_mosaic.version = 11 : i64} {
  func.func @_gwl_kernel(%arg0: i32, %arg1: i32, %arg2: memref<1x8x32xf32, #tpu.memory_space<vmem>>, %arg3: memref<1x8x32xf32, #tpu.memory_space<vmem>>, %arg4: memref<1x8xf32, #tpu.memory_space<vmem>>, %arg5: memref<1x8xf32, #tpu.memory_space<vmem>>) attributes {dimension_semantics = [#tpu.dimension_semantics<parallel>, #tpu.dimension_semantics<arbitrary>], iteration_bounds = array<i64: 1, 1>, scalar_prefetch = 0 : i64, scratch_operands = 0 : i64, tpu.core_type = #tpu.core_type<tc>, window_params = [{transform_indices = @transform_0, window_bounds = array<i64: 1, 8, 32>}, {pipeline_mode = #tpu.pipeline_mode<synchronous>, transform_indices = @transform_1, window_bounds = array<i64: 1, 8, 32>}, {pipeline_mode = #tpu.pipeline_mode<synchronous>, transform_indices = @transform_2, window_bounds = array<i64: 1, 8>}, {transform_indices = @transform_3, window_bounds = array<i64: 1, 8>}]} {
    %c0 = arith.constant 0 : index
    %c0_0 = arith.constant 0 : index
    %c0_1 = arith.constant 0 : index
    %0 = vector.load %arg3[%c0, %c0_0, %c0_1] : memref<1x8x32xf32, #tpu.memory_space<vmem>>, vector<1x8x32xf32>
    %1 = vector.shape_cast %0 : vector<1x8x32xf32> to vector<8x32xf32>
    %c0_2 = arith.constant 0 : index
    %c0_3 = arith.constant 0 : index
    %c0_4 = arith.constant 0 : index
    %2 = vector.load %arg2[%c0_2, %c0_3, %c0_4] : memref<1x8x32xf32, #tpu.memory_space<vmem>>, vector<1x8x32xf32>
    %3 = vector.shape_cast %1 : vector<8x32xf32> to vector<1x8x32xf32>
    %4 = arith.mulf %2, %3 : vector<1x8x32xf32>
    %cst = arith.constant dense<0.000000e+00> : vector<1x8xf32>
    %5 = vector.multi_reduction <add>, %4, %cst [2] : vector<1x8x32xf32> to vector<1x8xf32>
    %c0_5 = arith.constant 0 : index
    %c0_6 = arith.constant 0 : index
    %6 = vector.load %arg4[%c0_5, %c0_6] : memref<1x8xf32, #tpu.memory_space<vmem>>, vector<1x8xf32>
    %7 = arith.addf %5, %6 : vector<1x8xf32>
    %c0_7 = arith.constant 0 : index
    %c0_8 = arith.constant 0 : index
    %8 = vector.load %arg5[%c0_7, %c0_8] : memref<1x8xf32, #tpu.memory_space<vmem>>, vector<1x8xf32>
    tpu.vector_store %arg5[%c0_7, %c0_8], %7 {strides = array<i32>} : memref<1x8xf32, #tpu.memory_space<vmem>>, vector<1x8xf32>,
    return
  }
  func.func @transform_0(%arg0: i32, %arg1: i32) -> (i32, i32, i32) {
    %c0_i32 = arith.constant 0 : i32
    %c0_i32_0 = arith.constant 0 : i32
    return %arg0, %c0_i32, %arg1 : i32, i32, i32
  }
  func.func @transform_1(%arg0: i32, %arg1: i32) -> (i32, i32, i32) {
    %c0_i32 = arith.constant 0 : i32
    %c0_i32_0 = arith.constant 0 : i32
    %c0_i32_1 = arith.constant 0 : i32
    %c0_i32_2 = arith.constant 0 : i32
    return %c0_i32, %c0_i32_0, %c0_i32_1 : i32, i32, i32
  }
  func.func @transform_2(%arg0: i32, %arg1: i32) -> (i32, i32) {
    %c0_i32 = arith.constant 0 : i32
    %c0_i32_0 = arith.constant 0 : i32
    %c0_i32_1 = arith.constant 0 : i32
    return %c0_i32, %c0_i32_0 : i32, i32
  }
  func.func @transform_3(%arg0: i32, %arg1: i32) -> (i32, i32) {
    %c0_i32 = arith.constant 0 : i32
    %c0_i32_0 = arith.constant 0 : i32
    return %arg0, %c0_i32 : i32, i32
  }
}

</mosaic_0001>

<bundles_post_ra>
// kernel: tpu_custom_call.1
= control target key start
LH: loop header
LB: loop body
LE: loop exit
PB: predicated region body
PF: predicated region fallthrough
CT: control target
= control target key end

     0   :  { %8 = vsyncpa [#allocation3], 0  ;;  %s228_s0 = inlined_call_operand.hbm [shape: f32[1,8,32], index: 0, kind: input, shape index: {}]   ;;  %s229_s1 = inlined_call_operand.hbm [shape: f32[1,8,32], index: 1, kind: input, shape index: {}]   ;;  %s230_s2 = inlined_call_operand.vmem [shape: f32[1,8], index: 2, kind: input, shape index: {}]   ;;  %s231_s3 = inlined_call_operand.hbm [shape: f32[1,8], index: 3, kind: output, shape index: {}]  }
   0x1   :  { %9 = vsyncpa [#allocation6], 0 }
   0x2   :  { %10 = vsyncpa [#allocation4], 0  ;;  %s165_s12 = smov [#allocation2]   ;;  %s166_s14 = smov [#allocation5]  }
   0x3   :  { %s17_s13 = sshll.u32 %s165_s12, 4  ;;  %s27_s15 = sshll.u32 %s166_s14, 4  ;;  %s18_s13 = int_to_ptr.vmem [resolvable:$true] %s17_s13  ;;  %s28_s15 = int_to_ptr.vmem [resolvable:$true] %s27_s15 }
   0x4   :  { %s93_s18 = scalar_lea.hbm %s228_s0, 128 }
   0x5   :  { %p94_p0 = scmp.ne.s32.totalorder %s228_s0, %s93_s18  ;;  %p97_p1 = scmp.lt.u32.totalorder %s93_s18, %s228_s0 }
   0x7   :  { %p99_p2 = pnand %p97_p1, %p94_p0 }
   0x9   :  { %102 = shalt.err (!%p99_p2)
}
   0xa   :  { %s103_s23 = scalar_lea.vmem %s18_s13, 128  ;;  %p108_p4 = scmp.lt.s32.totalorder %s18_s13, %s18_s13 }
   0xb   :  { %p104_p3 = scmp.ne.s32.totalorder %s18_s13, %s103_s23  ;;  %p109_p5 = scmp.lt.s32.totalorder %s103_s23, %s103_s23 }
   0xd   :  { %p110_p6 = por %p109_p5, %p108_p4 }
   0xf   :  { %p111_p7 = pnand %p110_p6, %p104_p3 }
  0x11   :  { %114 = shalt.err (!%p111_p7)
}
  0x12   :  { %20 = dma.hbm_to_vmem [thread:$0]  %s228_s0, 128, %s18_s13, [#allocation3]  }
  0x13   :  { %s115_s28 = scalar_lea.hbm %s229_s1, 128 }
  0x14   :  { %p116_p8 = scmp.ne.s32.totalorder %s229_s1, %s115_s28  ;;  %p119_p9 = scmp.lt.u32.totalorder %s115_s28, %s229_s1 }
  0x16   :  { %p121_p10 = pnand %p119_p9, %p116_p8 }
  0x18   :  { %124 = shalt.err (!%p121_p10)
}
  0x19   :  { %s125_s6 = scalar_lea.vmem %s28_s15, 128  ;;  %p130_p12 = scmp.lt.s32.totalorder %s28_s15, %s28_s15 }
  0x1a   :  { %p126_p11 = scmp.ne.s32.totalorder %s28_s15, %s125_s6  ;;  %p131_p13 = scmp.lt.s32.totalorder %s125_s6, %s125_s6 }
  0x1c   :  { %p132_p0 = por %p131_p13, %p130_p12 }
  0x1e   :  { %p133_p1 = pnand %p132_p0, %p126_p11 }
  0x20   :  { %136 = shalt.err (!%p133_p1)
}
  0x21   :  { %30 = dma.hbm_to_vmem [thread:$0]  %s229_s1, 128, %s28_s15, [#allocation6]  }
  0x22   :  { %159 = dma.done.wait [#allocation3], 128  }
  0x23   :  { %160 = vsyncadd [#allocation3], 4294967168 }
  0x24   :  { %161 = dma.done.wait [#allocation6], 128  }
  0x25   :  { %162 = vsyncadd [#allocation6], 4294967168  ;;  %v39_v0 = vld [vmem:[#allocation5] sm:$0xff]  ;;  %v40_v1 = vld [vmem:[#allocation2] sm:$0xff]  ;;  %vm42_vm0 = vcmask 261120   ;;  %v167_v5 = vmov 0   ;;  %v61_v9 = vlaneseq }
  0x26   :  { %v41_v2 = vmul.f32 %v40_v1, %v39_v0  ;;  %v86_v4 = vld [vmem:[%s230_s2] ss:$0 sm:$0xff]  ;;  %91 = vset.pattern.permute.xlu1 %v167_v5  ;;  %92 = vset.pattern.permute.xlu0 %v167_v5  ;;  %s168_s1 = smov [#allocation7]   ;;  %vm68_vm1 = vcmask 57344  }
  0x27   :  { %v62_v10 = vand.u32 127, %v61_v9  ;;  %v64_v11 = vshrl.u32 %v61_v9, 7  ;;  %s76_s10 = sshll.u32 %s168_s1, 4  ;;  %s77_s10 = int_to_ptr.vmem [resolvable:$true] %s76_s10 }
  0x28   :  { %v43_v3 = vsel %vm42_vm0, %v41_v2, 0.0  ;;  %s137_s2 = scalar_lea.vmem %s77_s10, 16  ;;  %s141_s11 = scalar_lea.vmem %s77_s10, 32 }
  0x29   :  { %44 = vadd.xlane.f32.xlu0 %v43_v3  ;;  %v65_v12 = vsub.s32 %v62_v10, %v64_v11  ;;  %p138_p2 = scmp.ne.s32.totalorder %s77_s10, %s137_s2  ;;  %p142_p3 = scmp.lt.s32.totalorder %s77_s10, %s77_s10 }
  0x2a   :  { %p143_p4 = scmp.lt.s32.totalorder %s141_s11, %s137_s2 }
  0x2c   :  { %p144_p5 = por %p143_p4, %p142_p3 }
  0x2e   :  { %p145_p6 = pnand %p144_p5, %p138_p2 }
  0x3f   :  { %53 = vbcast.lane.b32.xlu0 %v86_v4, 256 }
  0xb6   :  { %v45_v6 = vpop.xlane.xlu0 %44 }
  0xba   :  { %v54_v7 = vpop.permute.xlu0 %53 }
  0xbb   :  { %v56_v8 = vadd.f32 %v54_v7, %v45_v6 }
  0xbd   :  { %59 = vperm.xlu1 %91, %v56_v8  }
 0x13c   :  { %v60_v13 = vpop.permute.xlu1 %59 }
 0x13d   :  { %v66_v14 = vrot.slane %v60_v13, %v65_v12 }
 0x13f   :  { %69 = vst.msk [vmem:[#allocation7] sm:$0x1] %vm68_vm1, %v66_v14 }
 0x140   :  { %148 = shalt.err (!%p145_p6)
}
 0x141   :  { %s149_s14 = scalar_lea.hbm %s231_s3, 16 }
 0x142   :  { %p150_p7 = scmp.ne.s32.totalorder %s231_s3, %s149_s14  ;;  %p153_p8 = scmp.lt.u32.totalorder %s149_s14, %s231_s3 }
 0x144   :  { %p155_p9 = pnand %p153_p8, %p150_p7 }
 0x146   :  { %158 = shalt.err (!%p155_p9)
}
 0x147   :  { %79 = dma.vmem_to_hbm [thread:$0]  %s77_s10, 16, %s231_s3, [#allocation4]  }
 0x148   :  { %163 = dma.done.wait [#allocation4], 16  }
 0x149   :  { %164 = vsyncadd [#allocation4], 4294967280 }
 0x14a   :  { %83 = vsyncpa [#allocation3], 1 }
 0x14b   :  { %84 = vsyncpa [#allocation6], 1 }
 0x14c   :  { %85 = vsyncpa [#allocation4], 1 }

</bundles_post_ra>
